<compile_context>
chip_gen: v6e
topology: v6e:2x2x1
jax: 0.10.0
libtpu: 0.0.40
codegen_flags: <defaults>
</compile_context>

<pallas_src>
import functools

import jax
import jax.numpy as jnp
from jax.experimental import pallas as pl
from jax.experimental.pallas import tpu as pltpu


def _sublane(dtype):
    return {4: 8, 2: 16, 1: 32}.get(jnp.dtype(dtype).itemsize, 8)


# --------------------- Mode "C": channel-tiled, full HW ----------------------
def _senet_kernel_ctile(x_ref, wd_ref, wu_ref, o_ref, yacc_ref, *,
                        inv_hw, c_tile, c_total, ragged_c):
    # x_ref : (n_tile, c_tile, HW)   contiguous activation slab (native dtype)
    # wd_ref: (c_tile, Cr)           conv_down weight slice (f32)
    # wu_ref: (Cr, C)                conv_up weight, VMEM-resident (f32)
    # o_ref : (n_tile, C)            f32 sigmoid excitation weights
    # yacc_ref: (n_tile, Cr)         f32 partial down-projection accumulator
    c_idx = pl.program_id(1)

    @pl.when(c_idx == 0)
    def _init():
        yacc_ref[...] = jnp.zeros_like(yacc_ref)

    # Global-average-pool this channel slab over the full spatial extent.
    pooled = jnp.sum(x_ref[...].astype(jnp.float32), axis=-1) * inv_hw  # (n_tile, c_tile)
    if ragged_c:
        # Zero out garbage channels of the partial last C block (wd is
        # zero-padded in the wrapper, so masked rows contribute exactly 0).
        ch = jax.lax.broadcasted_iota(jnp.int32, pooled.shape, 1) + c_idx * c_tile
        pooled = jnp.where(ch < c_total, pooled, 0.0)

    # Down-projection is linear in C -> accumulate partial GEMM across C tiles.
    yacc_ref[...] += jnp.dot(pooled, wd_ref[...], preferred_element_type=jnp.float32)

    @pl.when(c_idx == pl.num_programs(1) - 1)
    def _finalize():
        y = jnp.maximum(yacc_ref[...], 0.0)
        z = jnp.dot(y, wu_ref[...], preferred_element_type=jnp.float32)   # (n_tile, C)
        o_ref[...] = jax.nn.sigmoid(z)


# --------------------- Mode "HW": HW-streamed (huge HW) -----------------------
def _senet_kernel_hwstream(x_ref, wd_ref, wu_ref, o_ref, acc_ref, *,
                           inv_hw, hw_tile, hw_total, ragged_hw):
    # x_ref : (n_tile, C, hw_tile)   streamed spatial chunk (native dtype)
    # acc_ref: (n_tile, C)           f32 pooled-sum accumulator
    hw_idx = pl.program_id(1)

    @pl.when(hw_idx == 0)
    def _init():
        acc_ref[...] = jnp.zeros_like(acc_ref)

    xb = x_ref[...].astype(jnp.float32)
    if ragged_hw:
        # Mask garbage lanes of the ragged final HW chunk (no wrapper padding).
        pos = jax.lax.broadcasted_iota(jnp.int32, xb.shape, 2) + hw_idx * hw_tile
        xb = jnp.where(pos < hw_total, xb, 0.0)
    # HBM-bound: the per-chunk cross-lane reduce rides the idle XLU slot.
    acc_ref[...] += jnp.sum(xb, axis=-1)

    @pl.when(hw_idx == pl.num_programs(1) - 1)
    def _finalize():
        pooled = acc_ref[...] * inv_hw                                    # (n_tile, C)
        y = jnp.maximum(
            jnp.dot(pooled, wd_ref[...], preferred_element_type=jnp.float32), 0.0)
        z = jnp.dot(y, wu_ref[...], preferred_element_type=jnp.float32)   # (n_tile, C)
        o_ref[...] = jax.nn.sigmoid(z)


# Per-buffer x-block budget: double-buffered this stays < ~28 MiB, which fits
# every generation (including v7x's 64 MiB physical VMEM) with headroom.
_PER_BUFFER_BYTES = 12 * 1024 * 1024


def senet_forward(x, w_down, w_up):
    """x: (N, C, H, W); w_down: (Cr, C, 1, 1); w_up: (C, Cr, 1, 1)."""
    N, C, H, W = x.shape
    Cr = w_down.shape[0]
    HW = H * W
    itemsize = jnp.dtype(x.dtype).itemsize
    sub = _sublane(x.dtype)

    # n_tile: full N when small (block dim == array dim is always legal);
    # otherwise 8 -> grid_n >= 2 so the "parallel" axis shards across v7x TCs.
    n_tile = N if N <= 8 else 8
    grid_n = pl.cdiv(N, n_tile)

    x3 = x.reshape(N, C, HW)                                # metadata-only reshape
    wd_t = w_down.reshape(Cr, C).T.astype(jnp.float32)      # (C, Cr), cast hoisted
    wu_t = w_up.reshape(C, Cr).T.astype(jnp.float32)        # (Cr, C), cast hoisted

    # ----------------------------- mode / tile selection ---------------------
    if n_tile * C * HW * itemsize <= _PER_BUFFER_BYTES:
        mode, c_tile = "C", C                               # whole (C, HW) slab fits
    else:
        max_c = _PER_BUFFER_BYTES // max(1, n_tile * HW * itemsize)
        c_tile = (max_c // sub) * sub
        mode = "C" if c_tile >= sub else "HW"

    if mode == "C":
        grid_c = pl.cdiv(C, c_tile)
        ragged_c = (C % c_tile) != 0
        if ragged_c:
            # Pad only the tiny down-projection weight so masked channels hit 0s.
            wd_t = jnp.pad(wd_t, ((0, grid_c * c_tile - C), (0, 0)))
        grid = (grid_n, grid_c)
        kernel = functools.partial(
            _senet_kernel_ctile, inv_hw=1.0 / float(HW),
            c_tile=c_tile, c_total=C, ragged_c=ragged_c)
        in_specs = [
            # contiguous activation slabs; C (accumulation) axis is last in grid
            pl.BlockSpec((n_tile, c_tile, HW), lambda n, c: (n, c, 0)),
            pl.BlockSpec((c_tile, Cr), lambda n, c: (c, 0)),
            pl.BlockSpec((Cr, C), lambda n, c: (0, 0)),      # VMEM-resident
        ]
        out_specs = pl.BlockSpec((n_tile, C), lambda n, c: (n, 0))
        scratch_shapes = [pltpu.VMEM((n_tile, Cr), jnp.float32)]
        x_block_bytes = n_tile * c_tile * HW * itemsize
        scratch_bytes = n_tile * max(Cr, 128) * 4
    else:
        max_hw = _PER_BUFFER_BYTES // max(1, n_tile * C * itemsize)
        hw_tile = max(128, (max_hw // 128) * 128)
        hw_tile = min(hw_tile, ((HW + 127) // 128) * 128)
        grid_hw = pl.cdiv(HW, hw_tile)
        ragged_hw = (HW % hw_tile) != 0
        grid = (grid_n, grid_hw)
        kernel = functools.partial(
            _senet_kernel_hwstream, inv_hw=1.0 / float(HW),
            hw_tile=hw_tile, hw_total=HW, ragged_hw=ragged_hw)
        in_specs = [
            pl.BlockSpec((n_tile, C, hw_tile), lambda n, h: (n, 0, h)),
            pl.BlockSpec((C, Cr), lambda n, h: (0, 0)),      # VMEM-resident
            pl.BlockSpec((Cr, C), lambda n, h: (0, 0)),      # VMEM-resident
        ]
        out_specs = pl.BlockSpec((n_tile, C), lambda n, h: (n, 0))
        scratch_shapes = [pltpu.VMEM((n_tile, C), jnp.float32)]
        x_block_bytes = n_tile * C * hw_tile * itemsize
        scratch_bytes = n_tile * max(C, 128) * 4

    # VMEM audit: 2x-buffered x block + (double-counted) weights + output +
    # accumulator + headroom; keeps double-buffering alive on v7x (64 MiB/TC).
    w_bytes = int(wd_t.size + wu_t.size) * 4
    out_bytes = n_tile * max(C, 128) * 4
    working_set = 2 * x_block_bytes + 2 * w_bytes + 2 * out_bytes + scratch_bytes
    vmem_limit = int(min(max(working_set + (8 << 20), 24 << 20), 56 << 20))

    cost = pl.CostEstimate(
        flops=int(N * C * HW + 4 * N * C * Cr),
        transcendentals=int(N * C),
        bytes_accessed=int(N * C * HW * itemsize + w_bytes + N * C * 4),
    )

    out = pl.pallas_call(
        kernel,
        out_shape=jax.ShapeDtypeStruct((N, C), jnp.float32),   # f32 out; cast below
        grid_spec=pltpu.PrefetchScalarGridSpec(
            num_scalar_prefetch=0,
            grid=grid,
            in_specs=in_specs,
            out_specs=out_specs,
            scratch_shapes=scratch_shapes,
        ),
        compiler_params=pltpu.CompilerParams(
            dimension_semantics=("parallel", "arbitrary"),
            vmem_limit_bytes=vmem_limit,
        ),
        cost_estimate=cost,
    )(x3, wd_t, wu_t)

    return out.astype(x.dtype).reshape(N, C, 1, 1)


def senet_reference(x, w_down, w_up):
    """Pure-JAX reference mirroring the PyTorch forward."""
    N, C, H, W = x.shape
    Cr = w_down.shape[0]
    pooled = jnp.mean(x.astype(jnp.float32), axis=(2, 3))          # (N, C)
    y = jnp.maximum(pooled @ w_down.reshape(Cr, C).T, 0.0)         # (N, Cr)
    z = jax.nn.sigmoid(y @ w_up.reshape(C, Cr).T)                  # (N, C)
    return z.astype(x.dtype).reshape(N, C, 1, 1)


if __name__ == "__main__":
    # Small shapes consistent with the module: in_channels divisible by scale_factor=16.
    N, C, H, W = 2, 32, 16, 16
    scale_factor = 16
    Cr = C // scale_factor

    key = jax.random.PRNGKey(0)
    kx, kd, ku = jax.random.split(key, 3)

    x = jax.random.normal(kx, (N, C, H, W), dtype=jnp.float32)
    # Deterministic parameter init (shapes from nn.Conv2d(..., kernel_size=1, bias=False)).
    w_down = jax.random.normal(kd, (Cr, C, 1, 1), dtype=jnp.float32) * 0.1
    w_up = jax.random.normal(ku, (C, Cr, 1, 1), dtype=jnp.float32) * 0.1

    out = senet_forward(x, w_down, w_up)
    out = jax.block_until_ready(out)

    ref = senet_reference(x, w_down, w_up)
    assert out.shape == (N, C, 1, 1)
    assert jnp.allclose(out, ref, atol=1e-5, rtol=1e-5), "mismatch vs reference"

    print("KERNEL_OK")
</pallas_src>

<mosaic_0001>
module attributes {stable_mosaic.version = 11 : i64} {
  func.func @_senet_kernel_ctile(%arg0: i32, %arg1: i32, %arg2: memref<2x32x256xf32, #tpu.memory_space<vmem>>, %arg3: memref<32x2xf32, #tpu.memory_space<vmem>>, %arg4: memref<2x32xf32, #tpu.memory_space<vmem>>, %arg5: memref<2x32xf32, #tpu.memory_space<vmem>>, %arg6: memref<2x2xf32, #tpu.memory_space<vmem>>) attributes {dimension_semantics = [#tpu.dimension_semantics<parallel>, #tpu.dimension_semantics<arbitrary>], iteration_bounds = array<i64: 1, 1>, scalar_prefetch = 0 : i64, scratch_operands = 1 : i64, tpu.core_type = #tpu.core_type<tc>, window_params = [{transform_indices = @transform_0, window_bounds = array<i64: 2, 32, 256>}, {transform_indices = @transform_1, window_bounds = array<i64: 32, 2>}, {pipeline_mode = #tpu.pipeline_mode<synchronous>, transform_indices = @transform_2, window_bounds = array<i64: 2, 32>}, {transform_indices = @transform_3, window_bounds = array<i64: 2, 32>}]} {
    %c0_i32 = arith.constant 0 : i32
    %0 = arith.cmpi eq, %arg1, %c0_i32 : i32
    %1 = arith.extui %0 : i1 to i32
    %c0_i32_0 = arith.constant 0 : i32
    %2 = arith.cmpi ne, %1, %c0_i32_0 : i32
    scf.if %2 {
      %cst_13 = arith.constant 0.000000e+00 : f32
      %15 = vector.broadcast %cst_13 : f32 to vector<2x2xf32>
      %c0_14 = arith.constant 0 : index
      %c0_15 = arith.constant 0 : index
      %16 = vector.load %arg6[%c0_14, %c0_15] : memref<2x2xf32, #tpu.memory_space<vmem>>, vector<2x2xf32>
      tpu.vector_store %arg6[%c0_14, %c0_15], %15 {strides = array<i32>} : memref<2x2xf32, #tpu.memory_space<vmem>>, vector<2x2xf32>,
    } else {
    }
    %c0 = arith.constant 0 : index
    %c0_1 = arith.constant 0 : index
    %c0_2 = arith.constant 0 : index
    %3 = vector.load %arg2[%c0, %c0_1, %c0_2] : memref<2x32x256xf32, #tpu.memory_space<vmem>>, vector<2x32x256xf32>
    %cst = arith.constant dense<0.000000e+00> : vector<2x32xf32>
    %4 = vector.multi_reduction <add>, %3, %cst [2] : vector<2x32x256xf32> to vector<2x32xf32>
    %cst_3 = arith.constant 3.906250e-03 : f32
    %5 = vector.broadcast %cst_3 : f32 to vector<2x32xf32>
    %6 = arith.mulf %4, %5 : vector<2x32xf32>
    %c0_4 = arith.constant 0 : index
    %c0_5 = arith.constant 0 : index
    %7 = vector.load %arg6[%c0_4, %c0_5] : memref<2x2xf32, #tpu.memory_space<vmem>>, vector<2x2xf32>
    %c0_6 = arith.constant 0 : index
    %c0_7 = arith.constant 0 : index
    %8 = vector.load %arg3[%c0_6, %c0_7] : memref<32x2xf32, #tpu.memory_space<vmem>>, vector<32x2xf32>
    %cst_8 = arith.constant dense<0.000000e+00> : vector<2x2xf32>
    %9 = tpu.matmul %6, %8, %cst_8 {dimension_numbers = #tpu.dot_dimension_numbers<[1], [0], [0], [1], [0, 0, 1, 1], [], []>} : vector<2x32xf32>, vector<32x2xf32>, vector<2x2xf32> -> vector<2x2xf32>
    %10 = arith.addf %7, %9 : vector<2x2xf32>
    %c0_9 = arith.constant 0 : index
    %c0_10 = arith.constant 0 : index
    %11 = vector.load %arg6[%c0_9, %c0_10] : memref<2x2xf32, #tpu.memory_space<vmem>>, vector<2x2xf32>
    tpu.vector_store %arg6[%c0_9, %c0_10], %10 {strides = array<i32>} : memref<2x2xf32, #tpu.memory_space<vmem>>, vector<2x2xf32>,
    %c0_i32_11 = arith.constant 0 : i32
    %12 = arith.cmpi eq, %arg1, %c0_i32_11 : i32
    %13 = arith.extui %12 : i1 to i32
    %c0_i32_12 = arith.constant 0 : i32
    %14 = arith.cmpi ne, %13, %c0_i32_12 : i32
    scf.if %14 {
      %c0_13 = arith.constant 0 : index
      %c0_14 = arith.constant 0 : index
      %15 = vector.load %arg6[%c0_13, %c0_14] : memref<2x2xf32, #tpu.memory_space<vmem>>, vector<2x2xf32>
      %cst_15 = arith.constant 0.000000e+00 : f32
      %16 = vector.broadcast %cst_15 : f32 to vector<2x2xf32>
      %17 = arith.maximumf %15, %16 : vector<2x2xf32>
      %c0_16 = arith.constant 0 : index
      %c0_17 = arith.constant 0 : index
      %18 = vector.load %arg4[%c0_16, %c0_17] : memref<2x32xf32, #tpu.memory_space<vmem>>, vector<2x32xf32>
      %cst_18 = arith.constant dense<0.000000e+00> : vector<2x32xf32>
      %19 = tpu.matmul %17, %18, %cst_18 {dimension_numbers = #tpu.dot_dimension_numbers<[1], [0], [0], [1], [0, 0, 1, 1], [], []>} : vector<2x2xf32>, vector<2x32xf32>, vector<2x32xf32> -> vector<2x32xf32>
      %20 = arith.negf %19 : vector<2x32xf32>
      %21 = math.exp %20 : vector<2x32xf32>
      %cst_19 = arith.constant 1.000000e+00 : f32
      %22 = vector.broadcast %cst_19 : f32 to vector<2x32xf32>
      %23 = arith.addf %22, %21 : vector<2x32xf32>
      %24 = arith.divf %22, %23 : vector<2x32xf32>
      %c0_20 = arith.constant 0 : index
      %c0_21 = arith.constant 0 : index
      %25 = vector.load %arg5[%c0_20, %c0_21] : memref<2x32xf32, #tpu.memory_space<vmem>>, vector<2x32xf32>
      tpu.vector_store %arg5[%c0_20, %c0_21], %24 {strides = array<i32>} : memref<2x32xf32, #tpu.memory_space<vmem>>, vector<2x32xf32>,
    } else {
    }
    return
  }
  func.func @transform_0(%arg0: i32, %arg1: i32) -> (i32, i32, i32) {
    %c0_i32 = arith.constant 0 : i32
    %c0_i32_0 = arith.constant 0 : i32
    return %arg0, %arg1, %c0_i32 : i32, i32, i32
  }
  func.func @transform_1(%arg0: i32, %arg1: i32) -> (i32, i32) {
    %c0_i32 = arith.constant 0 : i32
    %c0_i32_0 = arith.constant 0 : i32
    return %arg1, %c0_i32 : i32, i32
  }
  func.func @transform_2(%arg0: i32, %arg1: i32) -> (i32, i32) {
    %c0_i32 = arith.constant 0 : i32
    %c0_i32_0 = arith.constant 0 : i32
    %c0_i32_1 = arith.constant 0 : i32
    return %c0_i32, %c0_i32_0 : i32, i32
  }
  func.func @transform_3(%arg0: i32, %arg1: i32) -> (i32, i32) {
    %c0_i32 = arith.constant 0 : i32
    %c0_i32_0 = arith.constant 0 : i32
    return %arg0, %c0_i32 : i32, i32
  }
}

</mosaic_0001>

<bundles_post_ra>
// kernel: tpu_custom_call.1
= control target key start
LH: loop header
LB: loop body
LE: loop exit
PB: predicated region body
PF: predicated region fallthrough
CT: control target
= control target key end

     0   :  { %8 = vsyncpa [#allocation4], 0  ;;  %s457_s0 = inlined_call_operand.hbm [shape: f32[2,32,256], index: 0, kind: input, shape index: {}]   ;;  %s458_s1 = inlined_call_operand.vmem [shape: f32[32,2], index: 1, kind: input, shape index: {}]   ;;  %s459_s2 = inlined_call_operand.vmem [shape: f32[2,32], index: 2, kind: input, shape index: {}]   ;;  %s460_s3 = inlined_call_operand.hbm [shape: f32[2,32], index: 3, kind: output, shape index: {}]  }
   0x1   :  { %9 = vsyncpa [#allocation5], 0  ;;  %s408_s12 = smov [#allocation3]  }
   0x2   :  { %s15_s13 = sshll.u32 %s408_s12, 4  ;;  %s16_s13 = int_to_ptr.vmem [resolvable:$true] %s15_s13 }
   0x3   :  { %s372_s14 = scalar_lea.vmem %s16_s13, 2048  ;;  %p377_p1 = scmp.lt.s32.totalorder %s16_s13, %s16_s13 }
   0x4   :  { %p373_p0 = scmp.ne.s32.totalorder %s16_s13, %s372_s14  ;;  %p378_p2 = scmp.lt.s32.totalorder %s372_s14, %s372_s14 }
   0x6   :  { %p379_p3 = por %p378_p2, %p377_p1 }
   0x8   :  { %p380_p4 = pnand %p379_p3, %p373_p0 }
   0xa   :  { %383 = shalt.err (!%p380_p4)
}
   0xb   :  { %s409_s15 = smov 256   ;;  %s410_s16 = smov 16  }
   0xc   :  { %21 = dma.hbm_to_vmem [thread:$0]  %s457_s0, 2048, %s16_s13, [#allocation4], %s409_s15, %s409_s15, %s410_s16  }
   0xd   :  { %404 = dma.done.wait [#allocation4], 2048  }
   0xe   :  { %405 = vsyncadd [#allocation4], 4294965248  ;;  %v43_v0 = vld [vmem:[#allocation3 + $0x40] sm:$0xff]  ;;  %v44_v1 = vld [vmem:[#allocation3 + $0x48] sm:$0xff]  ;;  %v411_v24 = vmov 0.0   ;;  %vm412_vm0 = vmmov 0   ;;  %v96_v29 = vlaneseq }
   0xf   :  { %v35_v2 = vld [vmem:[#allocation3] sm:$0xff]  ;;  %v63_v3 = vadd.f32 %v44_v1, %v43_v0  ;;  %v36_v4 = vld [vmem:[#allocation3 + $0x8] sm:$0xff]  ;;  %v45_v5 = vld [vmem:[#allocation3 + $0x50] sm:$0xff]  ;;  %338 = vmatprep.subr.mxu0 %v411_v24  ;;  %349 = vmatprep.subr.mxu1 %v411_v24  ;;  %vm33_vm1 = vcmask 9216   ;;  %vm107_vm2 = vcmask 130112   ;;  %vm114_vm3 = vcmask 195712  }
  0x10   :  { %v46_v6 = vld [vmem:[#allocation3 + $0x58] sm:$0xff]  ;;  %v51_v7 = vadd.f32 %v36_v4, %v35_v2  ;;  %v37_v8 = vld [vmem:[#allocation3 + $0x10] sm:$0xff]  ;;  %v47_v12 = vld [vmem:[#allocation3 + $0x60] sm:$0xff]  ;;  %346 = vmatprep.mubr.msk.f32.mxu0 %vm412_vm0, %v411_v24  ;;  %351 = vmatprep.mubr.msk.f32.mxu1 %vm412_vm0, %v411_v24  ;;  %34 = vst.msk [vmem:[#allocation2] sm:$0x3] %vm33_vm1, %v411_v24  ;;  %v97_v31 = vand.u32 127, %v96_v29 }
  0x11   :  { %v38_v9 = vld [vmem:[#allocation3 + $0x18] sm:$0xff]  ;;  %64 = vadd.xlane.f32.xlu1 %v63_v3  ;;  %v66_v10 = vadd.f32 %v46_v6, %v45_v5  ;;  %v48_v13 = vld [vmem:[#allocation3 + $0x68] sm:$0xff]  ;;  %v39_v14 = vld [vmem:[#allocation3 + $0x20] sm:$0xff]  ;;  %v99_v36 = vshrl.u32 %v96_v29, 7  ;;  %vm121_vm4 = vcmask 261312   ;;  %vm142_vm5 = vcmask 1041409  }
  0x12   :  { %52 = vadd.xlane.f32.xlu0 %v51_v7  ;;  %v54_v11 = vadd.f32 %v38_v9, %v37_v8  ;;  %v40_v15 = vld [vmem:[#allocation3 + $0x28] sm:$0xff]  ;;  %v69_v16 = vadd.f32 %v48_v13, %v47_v12  ;;  %v49_v18 = vld [vmem:[#allocation3 + $0x70] sm:$0xff]  ;;  %v50_v19 = vld [vmem:[#allocation3 + $0x78] sm:$0xff]  ;;  %v102_v33 = vadd.s32 4294967288, %v97_v31  ;;  %v109_v35 = vadd.s32 4294967280, %v97_v31 }
  0x13   :  { %v57_v17 = vadd.f32 %v40_v15, %v39_v14  ;;  %v41_v20 = vld [vmem:[#allocation3 + $0x30] sm:$0xff]  ;;  %v42_v21 = vld [vmem:[#allocation3 + $0x38] sm:$0xff]  ;;  %v72_v22 = vadd.f32 %v50_v19, %v49_v18  ;;  %v85_v27 = vld [vmem:[%s458_s1 + $0x8] sm:$0xff]  ;;  %v116_v40 = vadd.s32 4294967272, %v97_v31  ;;  %v100_v44 = vsub.s32 %v97_v31, %v99_v36 }
  0x14   :  { %v60_v23 = vadd.f32 %v42_v21, %v41_v20  ;;  %v87_v25 = vld [vmem:[%s458_s1 + $0x18] sm:$0xff]  ;;  %v86_v26 = vld [vmem:[%s458_s1 + $0x10] sm:$0xff]  ;;  %v84_v28 = vld [vmem:[%s458_s1] sm:$0xff]  ;;  %v105_v38 = vsub.s32 %v102_v33, %v99_v36  ;;  %v112_v42 = vsub.s32 %v109_v35, %v99_v36  ;;  %vm144_vm6 = vcmask 261120  }
  0x15   :  { %67 = vadd.xlane.f32.xlu1 %v66_v10  ;;  %339 = vmatpush3.msra.mxu0 %v87_v25  ;;  %v119_v51 = vsub.s32 %v116_v40, %v99_v36  ;;  %v225_v6 = vld [vmem:[%s459_s2] sm:$0x3]  ;;  %vm230_vm7 = vcmask 1041408   ;;  %vm226_vm8 = vcmask 15360   ;;  %s413_s2 = smov [#allocation6]   ;;  %vm310_vm9 = vcmask 254976  }
  0x16   :  { %55 = vadd.xlane.f32.xlu0 %v54_v11  ;;  %340 = vmatprep.subr.mxu0 %v411_v24  ;;  %s318_s27 = sshll.u32 %s413_s2, 4  ;;  %s319_s27 = int_to_ptr.vmem [resolvable:$true] %s318_s27 }
  0x17   :  { %341 = vmatpush3.msra.mxu0 %v86_v26  ;;  %350 = vmatpush3.msk.msra.mxu1 %vm230_vm7, %v225_v6  ;;  %v83_v7 = vld [vmem:[#allocation2] sm:$0x3]  ;;  %s384_s28 = scalar_lea.vmem %s319_s27, 32  ;;  %p389_p6 = scmp.lt.s32.totalorder %s319_s27, %s319_s27 }
  0x18   :  { %342 = vmatprep.subr.mxu0 %v411_v24  ;;  %p385_p5 = scmp.ne.s32.totalorder %s319_s27, %s384_s28  ;;  %p390_p7 = scmp.lt.s32.totalorder %s384_s28, %s384_s28 }
  0x19   :  { %70 = vadd.xlane.f32.xlu1 %v69_v16  ;;  %343 = vmatpush3.msra.mxu0 %v85_v27 }
  0x1a   :  { %58 = vadd.xlane.f32.xlu0 %v57_v17  ;;  %344 = vmatprep.subr.mxu0 %v411_v24  ;;  %p391_p8 = por %p390_p7, %p389_p6 }
  0x1b   :  { %345 = vmatpush3.msra.mxu0 %v84_v28 }
  0x1c   :  { %p392_p9 = pnand %p391_p8, %p385_p5 }
  0x1d   :  { %73 = vadd.xlane.f32.xlu1 %v72_v22 }
  0x1e   :  { %61 = vadd.xlane.f32.xlu0 %v60_v23 }
  0x9a   :  { %v65_v30 = vpop.xlane.xlu1 %64 }
  0x9b   :  { %v53_v32 = vpop.xlane.xlu0 %52  ;;  %v79_v45 = vmul.f32 0.00390625, %v65_v30 }
  0x9c   :  { %v75_v48 = vmul.f32 0.00390625, %v53_v32 }
  0x9d   :  { %v126_v55 = vrot.slane %v79_v45, %v100_v44 }
  0x9e   :  { %v68_v34 = vpop.xlane.xlu1 %67  ;;  %v101_v59 = vrot.slane %v75_v48, %v100_v44 }
  0x9f   :  { %v56_v37 = vpop.xlane.xlu0 %55  ;;  %v80_v39 = vmul.f32 0.00390625, %v68_v34 }
  0xa0   :  { %v76_v41 = vmul.f32 0.00390625, %v56_v37 }
  0xa1   :  { %v130_v50 = vrot.slane %v80_v39, %v105_v38 }
  0xa2   :  { %v71_v43 = vpop.xlane.xlu1 %70  ;;  %v106_v52 = vrot.slane %v76_v41, %v105_v38 }
  0xa3   :  { %v81_v46 = vmul.f32 0.00390625, %v71_v43  ;;  %v59_v47 = vpop.xlane.xlu0 %58  ;;  %v131_v61 = vsel %vm107_vm2, %v130_v50, %v126_v55 }
  0xa4   :  { %v77_v49 = vmul.f32 0.00390625, %v59_v47  ;;  %v108_v63 = vsel %vm107_vm2, %v106_v52, %v101_v59 }
  0xa5   :  { %v135_v53 = vrot.slane %v81_v46, %v112_v42 }
  0xa6   :  { %v74_v54 = vpop.xlane.xlu1 %73  ;;  %v113_v56 = vrot.slane %v77_v49, %v112_v42 }
  0xa7   :  { %v82_v57 = vmul.f32 0.00390625, %v74_v54  ;;  %v62_v58 = vpop.xlane.xlu0 %61  ;;  %v136_v0 = vsel %vm114_vm3, %v135_v53, %v131_v61 }
  0xa8   :  { %v78_v60 = vmul.f32 0.00390625, %v62_v58  ;;  %v115_v2 = vsel %vm114_vm3, %v113_v56, %v108_v63 }
  0xa9   :  { %v140_v62 = vrot.slane %v82_v57, %v119_v51 }
  0xaa   :  { %v120_v1 = vrot.slane %v78_v60, %v119_v51 }
  0xab   :  { %v141_v3 = vsel %vm121_vm4, %v140_v62, %v136_v0 }
  0xac   :  { %v122_v4 = vsel %vm121_vm4, %v120_v1, %v115_v2 }
  0xad   :  { %v143_v5 = vsel %vm142_vm5, %v141_v3, %v122_v4 }
  0xae   :  { %347 = vmatmul.mubr.msk.f32.vlgmr.msra.gmra.mxu0 %vm144_vm6, %v143_v5 }
 0x16e   :  { %v213_v8 = vpop.f32.mrf.mxu0 }
 0x16f   :  { %v217_v9 = vadd.f32 %v213_v8, %v83_v7 }
 0x170   :  { %v348_v10 = vpop.f32.mrf.mxu0 }
 0x171   :  { %219 = vst.msk [vmem:[#allocation2] sm:$0x3] %vm33_vm1, %v217_v9 }
 0x178   :  { %v223_v11 = vld [vmem:[#allocation2] sm:$0x3] }
 0x179   :  { %v224_v12 = vmax.f32 %v223_v11, 0.0 }
 0x17b   :  { %352 = vmatmul.mubr.msk.f32.vlgmr.msra.gmra.mxu1 %vm226_vm8, %v224_v12 }
 0x23b   :  { %v300_v13 = vpop.f32.mrf.mxu1 }
 0x23c   :  { %v330_v14 = vmul.f32 -1.442695, %v300_v13 }
 0x23d   :  { %v353_v15 = vpop.f32.mrf.mxu1 }
 0x23e   :  { %360 = vpow2.f32 %v330_v14 }
 0x24b   :  { %v361_v16 = vpop.eup %360 }
 0x24c   :  { %v307_v17 = vadd.f32 1.0, %v361_v16 }
 0x24e   :  { %362 = vrcp.f32 %v307_v17 }
 0x25b   :  { %v363_v18 = vpop.eup %362 }
 0x25c   :  { %311 = vst.msk [vmem:[#allocation6] sm:$0x3] %vm310_vm9, %v363_v18 }
 0x25d   :  { %395 = shalt.err (!%p392_p9)
}
 0x25e   :  { %321 = dma.vmem_to_hbm [thread:$0]  %s319_s27, 32, %s460_s3, [#allocation5]  }
 0x25f   :  { %406 = dma.done.wait [#allocation5], 32  }
 0x260   :  { %407 = vsyncadd [#allocation5], 4294967264 }
 0x261   :  { %325 = vsyncpa [#allocation4], 1 }
 0x262   :  { %326 = vsyncpa [#allocation5], 1 }

</bundles_post_ra>
